<compile_context>
chip_gen: v7x
topology: tpu7x:2x2x1
jax: 0.10.0
libtpu: 0.0.40
codegen_flags: <defaults>
</compile_context>

<pallas_src>
import jax
import jax.numpy as jnp
from jax.experimental import pallas as pl
from jax.experimental.pallas import tpu as pltpu


def _cdiv(a, b):
    return -(-a // b)


def _round_up(n, m):
    return _cdiv(n, m) * m


def _choose_batch_tile(B, batch_tile, mxu_m=256):
    """Even split of B into tiles.

    Rounds the tile to MXU-M granularity (256) when tiles are large (keeps MXU
    M-passes full, amortizes ~0.35us/step overhead) and to the 8-sublane
    granule when tiles are small (minimizes padded rows at small/awkward B).
    """
    n_tiles = _cdiv(B, batch_tile)
    per_tile = _cdiv(B, n_tiles)
    gran = mxu_m if per_tile >= mxu_m else 8
    return _round_up(per_tile, gran)


def _soft_q_kernel(xa_ref, w1_ref, b1_ref, w2_ref, b2_ref, w3_ref, b3_ref,
                   o_ref):
    """One (critic, batch-tile) step of q = fc3(relu(fc2(relu(fc1([x, a])))))."""
    c = pl.program_id(0)                              # critic index
    xa = xa_ref[...]                                  # [tb, 4] f32 (x ++ a)
    w1 = w1_ref[...]                                  # [4, H] f32

    # --- fc1 (K=4): concat fused in wrapper; VPU broadcast multiply-adds. ---
    h1 = (xa[:, 0:1] * w1[0:1, :]
          + xa[:, 1:2] * w1[1:2, :]
          + xa[:, 2:3] * w1[2:3, :]
          + xa[:, 3:4] * w1[3:4, :]
          + b1_ref[...])                              # [tb, H] f32
    h1 = jnp.maximum(h1, 0.0)

    # --- fc2 (256 x 256): MXU matmul, bf16 inputs, f32 accumulate. ----------
    h2 = jnp.dot(h1.astype(jnp.bfloat16), w2_ref[...],
                 preferred_element_type=jnp.float32) + b2_ref[...]
    h2 = jnp.maximum(h2, 0.0)                         # [tb, H] f32

    # --- fc3 (N=1): VPU multiply + lane reduce instead of a degenerate dot. -
    q = jnp.sum(h2 * w3_ref[...], axis=-1, keepdims=True) + b3_ref[c]
    o_ref[...] = q.astype(o_ref.dtype)                # [tb, 1]


def soft_q_forward(x, a, params_list, *, batch_tile=2048):
    """Fused forward of C SoftQNetwork critics.

    x: [B, 2], a: [B, 2]; params_list: sequence of (w1, b1, w2, b2, w3, b3)
    with each w shaped [in, out] (transposed vs PyTorch). Returns [C, B, 1].
    """
    C = len(params_list)
    B = x.shape[0]
    H = params_list[0][0].shape[1]                    # 256

    # Stack per-critic weights on a leading axis and pre-shape for the kernel;
    # fc2 weight in bf16 (halves DMA/VMEM, full MXU rate), fc3 as a row,
    # fc3 biases as SMEM scalars.
    w1 = jnp.stack([jnp.asarray(p[0], jnp.float32) for p in params_list])      # [C,4,H]
    b1 = jnp.stack([jnp.asarray(p[1], jnp.float32).reshape(1, H)
                    for p in params_list])                                      # [C,1,H]
    w2 = jnp.stack([jnp.asarray(p[2]) for p in params_list]).astype(jnp.bfloat16)  # [C,H,H]
    b2 = jnp.stack([jnp.asarray(p[3], jnp.float32).reshape(1, H)
                    for p in params_list])                                      # [C,1,H]
    w3 = jnp.stack([jnp.asarray(p[4], jnp.float32).reshape(1, H)
                    for p in params_list])                                      # [C,1,H]
    b3 = jnp.stack([jnp.asarray(p[5], jnp.float32).reshape(())
                    for p in params_list])                                      # [C]

    # Fuse concat([x, a]) in the wrapper: one [B, 4] input, half the tiny DMAs.
    xa = jnp.concatenate([x, a], axis=1).astype(jnp.float32)

    tb = _choose_batch_tile(B, batch_tile)
    n_tiles = _cdiv(B, tb)
    b_pad = n_tiles * tb
    if b_pad != B:
        xa = jnp.pad(xa, ((0, b_pad - B), (0, 0)))

    # Critic axis outermost: weights re-DMA'd only C times total and stay
    # VMEM-resident across the inner batch loop; v7x's two TCs split critics.
    grid = (C, n_tiles)

    cost = pl.CostEstimate(
        flops=2 * C * b_pad * (4 * H + H * H + H),
        transcendentals=0,
        bytes_accessed=(C * b_pad * 4 * 4                      # xa (read per critic)
                        + C * (4 * H * 4                        # w1
                               + H * H * 2                      # w2 (bf16)
                               + 3 * H * 4 + 4)                 # b1, b2, w3 row, b3
                        + C * b_pad * 4),                       # q
    )

    out = pl.pallas_call(
        _soft_q_kernel,
        out_shape=jax.ShapeDtypeStruct((C, b_pad, 1), jnp.float32),
        grid=grid,
        in_specs=[
            pl.BlockSpec((tb, 4), lambda c, i: (i, 0)),            # xa batch tile
            pl.BlockSpec((None, 4, H), lambda c, i: (c, 0, 0)),    # w1[c] (resident)
            pl.BlockSpec((None, 1, H), lambda c, i: (c, 0, 0)),    # b1[c]
            pl.BlockSpec((None, H, H), lambda c, i: (c, 0, 0)),    # w2[c] bf16 (resident)
            pl.BlockSpec((None, 1, H), lambda c, i: (c, 0, 0)),    # b2[c]
            pl.BlockSpec((None, 1, H), lambda c, i: (c, 0, 0)),    # w3[c] row
            pl.BlockSpec(memory_space=pltpu.MemorySpace.SMEM),     # b3 scalars [C]
        ],
        out_specs=pl.BlockSpec((None, tb, 1), lambda c, i: (c, i, 0)),
        compiler_params=pltpu.CompilerParams(
            dimension_semantics=("parallel", "parallel"),          # critics x tiles
            vmem_limit_bytes=64 * 1024 * 1024,                     # v5e scoped-VMEM headroom
        ),
        cost_estimate=cost,
    )(xa, w1, b1, w2, b2, w3, b3)

    return out[:, :B, :]


def soft_q_forward_single(x, a, params, *, batch_tile=2048):
    """Exact single-critic equivalent of SoftQNetwork.forward: [B, 2],[B, 2] -> [B, 1]."""
    return soft_q_forward(x, a, (params,), batch_tile=batch_tile)[0]


def init_params(key):
    """Deterministic init matching PyTorch nn.Linear default U(-1/sqrt(fan_in), +)."""
    def linear(key, fan_in, fan_out):
        kw, kb = jax.random.split(key)
        bound = 1.0 / jnp.sqrt(fan_in)
        w = jax.random.uniform(kw, (fan_in, fan_out), jnp.float32,
                               minval=-bound, maxval=bound)
        b = jax.random.uniform(kb, (1, fan_out), jnp.float32,
                               minval=-bound, maxval=bound)
        return w, b

    k1, k2, k3 = jax.random.split(key, 3)
    w1, b1 = linear(k1, 4, 256)     # fc1: Linear(2 + 2, 256)
    w2, b2 = linear(k2, 256, 256)   # fc2: Linear(256, 256)
    w3, b3 = linear(k3, 256, 1)     # fc3: Linear(256, 1)
    return (w1, b1, w2, b2, w3, b3)


def _ref_f32(p, x, a):
    w1, b1, w2, b2, w3, b3 = p
    xa = jnp.concatenate([x, a], axis=1)
    h1 = jnp.maximum(xa @ w1 + b1, 0.0)
    h2 = jnp.maximum(h1 @ w2 + b2, 0.0)
    return h2 @ w3 + b3


def _ref_bf16(p, x, a):
    w1, b1, w2, b2, w3, b3 = p
    xa = jnp.concatenate([x, a], axis=1)
    h1 = jnp.maximum(xa @ w1 + b1, 0.0)
    h2 = jnp.maximum(
        jnp.dot(h1.astype(jnp.bfloat16), w2.astype(jnp.bfloat16),
                preferred_element_type=jnp.float32) + b2, 0.0)
    return h2 @ w3 + b3


if __name__ == "__main__":
    key = jax.random.PRNGKey(0)
    kp1, kp2, kx, ka = jax.random.split(key, 4)

    params1 = init_params(kp1)   # Q1
    params2 = init_params(kp2)   # Q2

    # --- Small serving-style batch, both critics fused in one call. ---------
    B = 8
    x = jax.random.normal(kx, (B, 2), jnp.float32)   # observation (2-dim)
    a = jax.random.normal(ka, (B, 2), jnp.float32)   # action (2-dim)

    q = soft_q_forward(x, a, (params1, params2))
    jax.block_until_ready(q)
    assert q.shape == (2, B, 1)

    for c, p in enumerate((params1, params2)):
        # Reference 1: mirrors the kernel's bf16 fc2 operands (f32 accumulate).
        assert jnp.allclose(q[c], _ref_bf16(p, x, a), atol=2e-3, rtol=2e-3)
        # Reference 2: all-f32 PyTorch-equivalent math (loose tol for bf16 fc2).
        assert jnp.allclose(q[c], _ref_f32(p, x, a), atol=5e-2, rtol=5e-2)

    # --- Single-critic path == original SoftQNetwork.forward semantics. -----
    q1 = soft_q_forward_single(x, a, params1)
    jax.block_until_ready(q1)
    assert q1.shape == (B, 1)
    assert jnp.allclose(q1, q[0], atol=1e-6, rtol=1e-6)

    # --- Multi-tile + padded batch path (grid=(2, n_tiles), out[:B] slice). --
    B2 = 300
    x2 = jax.random.normal(jax.random.fold_in(kx, 1), (B2, 2), jnp.float32)
    a2 = jax.random.normal(jax.random.fold_in(ka, 1), (B2, 2), jnp.float32)
    q2 = soft_q_forward(x2, a2, (params1, params2), batch_tile=128)
    jax.block_until_ready(q2)
    assert q2.shape == (2, B2, 1)
    assert jnp.allclose(q2[0], _ref_bf16(params1, x2, a2), atol=2e-3, rtol=2e-3)
    assert jnp.allclose(q2[1], _ref_bf16(params2, x2, a2), atol=2e-3, rtol=2e-3)

    print("KERNEL_OK")
</pallas_src>

<mosaic_0001>
module attributes {stable_mosaic.version = 11 : i64} {
  func.func @_soft_q_kernel(%arg0: i32, %arg1: i32, %arg2: memref<8x4xf32, #tpu.memory_space<vmem>>, %arg3: memref<1x4x256xf32, #tpu.memory_space<vmem>>, %arg4: memref<1x1x256xf32, #tpu.memory_space<vmem>>, %arg5: memref<1x256x256xbf16, #tpu.memory_space<vmem>>, %arg6: memref<1x1x256xf32, #tpu.memory_space<vmem>>, %arg7: memref<1x1x256xf32, #tpu.memory_space<vmem>>, %arg8: memref<2xf32, #tpu.memory_space<smem>>, %arg9: memref<1x8x1xf32, #tpu.memory_space<vmem>>) attributes {dimension_semantics = [#tpu.dimension_semantics<parallel>, #tpu.dimension_semantics<parallel>], iteration_bounds = array<i64: 2, 1>, scalar_prefetch = 0 : i64, scratch_operands = 0 : i64, tpu.core_type = #tpu.core_type<tc>, window_params = [{transform_indices = @transform_0, window_bounds = array<i64: 8, 4>}, {transform_indices = @transform_1, window_bounds = array<i64: 1, 4, 256>}, {transform_indices = @transform_2, window_bounds = array<i64: 1, 1, 256>}, {transform_indices = @transform_3, window_bounds = array<i64: 1, 256, 256>}, {transform_indices = @transform_4, window_bounds = array<i64: 1, 1, 256>}, {transform_indices = @transform_5, window_bounds = array<i64: 1, 1, 256>}, {transform_indices = @transform_6, window_bounds = array<i64: 2>}, {transform_indices = @transform_7, window_bounds = array<i64: 1, 8, 1>}]} {
    %c0 = arith.constant 0 : index
    %c0_0 = arith.constant 0 : index
    %0 = vector.load %arg2[%c0, %c0_0] : memref<8x4xf32, #tpu.memory_space<vmem>>, vector<8x4xf32>
    %c0_1 = arith.constant 0 : index
    %c0_2 = arith.constant 0 : index
    %c0_3 = arith.constant 0 : index
    %1 = vector.load %arg3[%c0_1, %c0_2, %c0_3] : memref<1x4x256xf32, #tpu.memory_space<vmem>>, vector<1x4x256xf32>
    %2 = vector.shape_cast %1 : vector<1x4x256xf32> to vector<4x256xf32>
    %3 = vector.extract_strided_slice %0 {offsets = [0, 0], sizes = [8, 1], strides = [1, 1]} : vector<8x4xf32> to vector<8x1xf32>
    %4 = vector.extract_strided_slice %2 {offsets = [0, 0], sizes = [1, 256], strides = [1, 1]} : vector<4x256xf32> to vector<1x256xf32>
    %5 = vector.broadcast %3 : vector<8x1xf32> to vector<8x256xf32>
    %6 = vector.broadcast %4 : vector<1x256xf32> to vector<8x256xf32>
    %7 = arith.mulf %5, %6 : vector<8x256xf32>
    %8 = vector.extract_strided_slice %0 {offsets = [0, 1], sizes = [8, 1], strides = [1, 1]} : vector<8x4xf32> to vector<8x1xf32>
    %9 = vector.extract_strided_slice %2 {offsets = [1, 0], sizes = [1, 256], strides = [1, 1]} : vector<4x256xf32> to vector<1x256xf32>
    %10 = vector.broadcast %8 : vector<8x1xf32> to vector<8x256xf32>
    %11 = vector.broadcast %9 : vector<1x256xf32> to vector<8x256xf32>
    %12 = arith.mulf %10, %11 : vector<8x256xf32>
    %13 = arith.addf %7, %12 : vector<8x256xf32>
    %14 = vector.extract_strided_slice %0 {offsets = [0, 2], sizes = [8, 1], strides = [1, 1]} : vector<8x4xf32> to vector<8x1xf32>
    %15 = vector.extract_strided_slice %2 {offsets = [2, 0], sizes = [1, 256], strides = [1, 1]} : vector<4x256xf32> to vector<1x256xf32>
    %16 = vector.broadcast %14 : vector<8x1xf32> to vector<8x256xf32>
    %17 = vector.broadcast %15 : vector<1x256xf32> to vector<8x256xf32>
    %18 = arith.mulf %16, %17 : vector<8x256xf32>
    %19 = arith.addf %13, %18 : vector<8x256xf32>
    %20 = vector.extract_strided_slice %0 {offsets = [0, 3], sizes = [8, 1], strides = [1, 1]} : vector<8x4xf32> to vector<8x1xf32>
    %21 = vector.extract_strided_slice %2 {offsets = [3, 0], sizes = [1, 256], strides = [1, 1]} : vector<4x256xf32> to vector<1x256xf32>
    %22 = vector.broadcast %20 : vector<8x1xf32> to vector<8x256xf32>
    %23 = vector.broadcast %21 : vector<1x256xf32> to vector<8x256xf32>
    %24 = arith.mulf %22, %23 : vector<8x256xf32>
    %25 = arith.addf %19, %24 : vector<8x256xf32>
    %c0_4 = arith.constant 0 : index
    %c0_5 = arith.constant 0 : index
    %c0_6 = arith.constant 0 : index
    %26 = vector.load %arg4[%c0_4, %c0_5, %c0_6] : memref<1x1x256xf32, #tpu.memory_space<vmem>>, vector<1x1x256xf32>
    %27 = vector.shape_cast %26 : vector<1x1x256xf32> to vector<1x256xf32>
    %28 = vector.broadcast %27 : vector<1x256xf32> to vector<8x256xf32>
    %29 = arith.addf %25, %28 : vector<8x256xf32>
    %cst = arith.constant 0.000000e+00 : f32
    %30 = vector.broadcast %cst : f32 to vector<8x256xf32>
    %31 = arith.maximumf %29, %30 : vector<8x256xf32>
    %32 = arith.truncf %31 : vector<8x256xf32> to vector<8x256xbf16>
    %c0_7 = arith.constant 0 : index
    %c0_8 = arith.constant 0 : index
    %c0_9 = arith.constant 0 : index
    %33 = vector.load %arg5[%c0_7, %c0_8, %c0_9] : memref<1x256x256xbf16, #tpu.memory_space<vmem>>, vector<1x256x256xbf16>
    %34 = vector.shape_cast %33 : vector<1x256x256xbf16> to vector<256x256xbf16>
    %cst_10 = arith.constant dense<0.000000e+00> : vector<8x256xf32>
    %35 = tpu.matmul %32, %34, %cst_10 {dimension_numbers = #tpu.dot_dimension_numbers<[1], [0], [0], [1], [0, 0, 1, 1], [], []>} : vector<8x256xbf16>, vector<256x256xbf16>, vector<8x256xf32> -> vector<8x256xf32>
    %c0_11 = arith.constant 0 : index
    %c0_12 = arith.constant 0 : index
    %c0_13 = arith.constant 0 : index
    %36 = vector.load %arg6[%c0_11, %c0_12, %c0_13] : memref<1x1x256xf32, #tpu.memory_space<vmem>>, vector<1x1x256xf32>
    %37 = vector.shape_cast %36 : vector<1x1x256xf32> to vector<1x256xf32>
    %38 = vector.broadcast %37 : vector<1x256xf32> to vector<8x256xf32>
    %39 = arith.addf %35, %38 : vector<8x256xf32>
    %cst_14 = arith.constant 0.000000e+00 : f32
    %40 = vector.broadcast %cst_14 : f32 to vector<8x256xf32>
    %41 = arith.maximumf %39, %40 : vector<8x256xf32>
    %c0_15 = arith.constant 0 : index
    %c0_16 = arith.constant 0 : index
    %c0_17 = arith.constant 0 : index
    %42 = vector.load %arg7[%c0_15, %c0_16, %c0_17] : memref<1x1x256xf32, #tpu.memory_space<vmem>>, vector<1x1x256xf32>
    %43 = vector.shape_cast %42 : vector<1x1x256xf32> to vector<1x256xf32>
    %44 = vector.broadcast %43 : vector<1x256xf32> to vector<8x256xf32>
    %45 = arith.mulf %41, %44 : vector<8x256xf32>
    %cst_18 = arith.constant dense<0.000000e+00> : vector<8xf32>
    %46 = vector.multi_reduction <add>, %45, %cst_18 [1] : vector<8x256xf32> to vector<8xf32>
    %47 = vector.shape_cast %46 : vector<8xf32> to vector<8x1xf32>
    %48 = arith.index_cast %arg0 : i32 to index
    %49 = memref.load %arg8[%48] : memref<2xf32, #tpu.memory_space<smem>>
    %50 = vector.broadcast %49 : f32 to vector<8x1xf32>
    %51 = arith.addf %47, %50 : vector<8x1xf32>
    %c0_19 = arith.constant 0 : index
    %c0_20 = arith.constant 0 : index
    %c0_21 = arith.constant 0 : index
    %52 = vector.load %arg9[%c0_19, %c0_20, %c0_21] : memref<1x8x1xf32, #tpu.memory_space<vmem>>, vector<1x8x1xf32>
    %53 = vector.shape_cast %52 : vector<1x8x1xf32> to vector<8x1xf32>
    %54 = vector.shape_cast %51 : vector<8x1xf32> to vector<1x8x1xf32>
    tpu.vector_store %arg9[%c0_19, %c0_20, %c0_21], %54 {strides = array<i32>} : memref<1x8x1xf32, #tpu.memory_space<vmem>>, vector<1x8x1xf32>,
    return
  }
  func.func @transform_0(%arg0: i32, %arg1: i32) -> (i32, i32) {
    %c0_i32 = arith.constant 0 : i32
    %c0_i32_0 = arith.constant 0 : i32
    return %arg1, %c0_i32 : i32, i32
  }
  func.func @transform_1(%arg0: i32, %arg1: i32) -> (i32, i32, i32) {
    %c0_i32 = arith.constant 0 : i32
    %c0_i32_0 = arith.constant 0 : i32
    %c0_i32_1 = arith.constant 0 : i32
    return %arg0, %c0_i32, %c0_i32_0 : i32, i32, i32
  }
  func.func @transform_2(%arg0: i32, %arg1: i32) -> (i32, i32, i32) {
    %c0_i32 = arith.constant 0 : i32
    %c0_i32_0 = arith.constant 0 : i32
    %c0_i32_1 = arith.constant 0 : i32
    return %arg0, %c0_i32, %c0_i32_0 : i32, i32, i32
  }
  func.func @transform_3(%arg0: i32, %arg1: i32) -> (i32, i32, i32) {
    %c0_i32 = arith.constant 0 : i32
    %c0_i32_0 = arith.constant 0 : i32
    %c0_i32_1 = arith.constant 0 : i32
    return %arg0, %c0_i32, %c0_i32_0 : i32, i32, i32
  }
  func.func @transform_4(%arg0: i32, %arg1: i32) -> (i32, i32, i32) {
    %c0_i32 = arith.constant 0 : i32
    %c0_i32_0 = arith.constant 0 : i32
    %c0_i32_1 = arith.constant 0 : i32
    return %arg0, %c0_i32, %c0_i32_0 : i32, i32, i32
  }
  func.func @transform_5(%arg0: i32, %arg1: i32) -> (i32, i32, i32) {
    %c0_i32 = arith.constant 0 : i32
    %c0_i32_0 = arith.constant 0 : i32
    %c0_i32_1 = arith.constant 0 : i32
    return %arg0, %c0_i32, %c0_i32_0 : i32, i32, i32
  }
  func.func @transform_6(%arg0: i32, %arg1: i32) -> i32 {
    %c0_i32 = arith.constant 0 : i32
    %c0_i32_0 = arith.constant 0 : i32
    return %c0_i32 : i32
  }
  func.func @transform_7(%arg0: i32, %arg1: i32) -> (i32, i32, i32) {
    %c0_i32 = arith.constant 0 : i32
    %c0_i32_0 = arith.constant 0 : i32
    return %arg0, %arg1, %c0_i32 : i32, i32, i32
  }
}

</mosaic_0001>

<bundles_post_ra>
// kernel: tpu_custom_call.1
= control target key start
LH: loop header
LB: loop body
LE: loop exit
PB: predicated region body
PF: predicated region fallthrough
CT: control target
= control target key end

     0   :  { %s2114_s0 = inlined_call_operand.hbm [shape: f32[8,4], index: 0, kind: input, shape index: {}]   ;;  %s2115_s1 = inlined_call_operand.hbm [shape: f32[2,4,256], index: 1, kind: input, shape index: {}]   ;;  %s2116_s2 = inlined_call_operand.hbm [shape: f32[2,1,256], index: 2, kind: input, shape index: {}]   ;;  %s2117_s3 = inlined_call_operand.hbm [shape: bf16[2,256,256], index: 3, kind: input, shape index: {}]   ;;  %s2118_s4 = inlined_call_operand.hbm [shape: f32[2,1,256], index: 4, kind: input, shape index: {}]   ;;  %s2119_s5 = inlined_call_operand.hbm [shape: f32[2,1,256], index: 5, kind: input, shape index: {}]   ;;  %s2120_s6 = inlined_call_operand.hbm [shape: f32[2], index: 6, kind: input, shape index: {}]   ;;  %s2121_s7 = inlined_call_operand.hbm [shape: f32[2,8,1], index: 7, kind: output, shape index: {}]  }
   0x1   :  { %2141 = sst [smem:[#allocation30_spill]] %s2115_s1 }
   0x2   :  { %2142 = sst [smem:[#allocation31_spill]] %s2117_s3 }
   0x3   :  { %2143 = sst [smem:[#allocation32_spill]] %s2121_s7 }
   0x4   :  { %12 = vsyncpa [#allocation3], 0 }
   0x5   :  { %13 = vsyncpa [#allocation7], 0 }
   0x6   :  { %15 = vsyncpa [#allocation7 + $0x1], 0 }
   0x7   :  { %16 = vsyncpa [#allocation10], 0 }
   0x8   :  { %18 = vsyncpa [#allocation10 + $0x1], 0 }
   0x9   :  { %19 = vsyncpa [#allocation13], 0 }
   0xa   :  { %21 = vsyncpa [#allocation13 + $0x1], 0 }
   0xb   :  { %22 = vsyncpa [#allocation5], 0 }
   0xc   :  { %23 = vsyncpa [#allocation4], 0 }
   0xd   :  { %25 = vsyncpa [#allocation4 + $0x1], 0  ;;  %s1666_s24 = smov 0   ;;  %s1668_s25 = smov 0  }
   0xe   :  { %s1670_s26 = smov 0   ;;  %s1672_s27 = smov 0  }
   0xf   :  { %s1674_s28 = smov 0   ;;  %s1676_s29 = smov 0  }
  0x10 LB: > { %2144 = sst [smem:[#allocation22_spill]] %s1590_s24  ;;  %s43_s30 = sadd.s32 1, %s1606_s28  ;;  %s1610_s29 = sphi %s1676_s29, %s31_s29   ;;  %s1606_s28 = sphi %s1674_s28, %s2183_s28   ;;  %s1602_s27 = sphi %s1672_s27, %s2182_s27   ;;  %s1598_s26 = sphi %s1670_s26, %s2181_s26   ;;  %s1594_s25 = sphi %s1668_s25, %s2185_s25   ;;  %s1590_s24 = sphi %s1666_s24, %s2184_s24  }
  0x11   : > { %2145 = sst [smem:[#allocation23_spill]] %s1598_s26  ;;  %s76_s8 = sadd.s32 1, %s1598_s26 }
  0x12   : > { %2146 = sst [smem:[#allocation24_spill]] %s1606_s28  ;;  %p45_p0 = scmp.ge.s32.totalorder %s43_s30, 2 }
  0x13   : > { %2147 = sst [smem:[#allocation25_spill]] %s1610_s29  ;;  %p2122_p1 = scmp.ne.s32.totalorder %s1598_s26, %s1594_s25 }
  0x14   : > { %p84_p2 = scmp.eq.s32.totalorder %s1610_s29, 0  ;;  %s2187_s30 = smov (%p45_p0, %s43_s30), 0 }
  0x15   : > { %2148 = sst [smem:[#allocation26_spill]] %s2187_s30  ;;  %p1208_p5 = scmp.lt.s32.totalorder %s1610_s29, 2 }
  0x16   : > { %p85_p4 = por %p84_p2, %p2122_p1  ;;  %s73_s9 = ssub.s32 %s1606_s28, %s2187_s30 }
  0x17   : > { %s288_s10 = sand.u32 1, %s1610_s29   ;;  %p74_p6 = scmp.eq.s32.totalorder %s73_s9, 0 }
  0x18   : > { %s1712_s11 = sand.u32 1, %s1598_s26   ;;  %s1154_s12 = sshll.u32 %s1606_s28, 7 }
  0x19   : > { %s1716_s13 = scalar_select %p74_p6, %s1598_s26, %s76_s8  }
  0x1a   : > { %s1094_s14 = sshll.u32 %s1712_s11, 3  ;;  %s2150_s1 = sld [smem:[#allocation30_spill]] }
  0x1b   : > { %2149 = sst [smem:[#allocation27_spill]] %s1716_s13  ;;  %p1724_p7 = pnand %p1208_p5, %p85_p4 }
  0x1c   : > { %s292_s19 = scalar_lea.vmem [#allocation6], %s1094_s14  ;;  %s1732_s21 = scalar_lea.sflag [#allocation7], %s288_s10 }
  0x1d   : > { %s2151_s18 = scalar_select %p1724_p7, 1, 0 }
  0x1e   : > { %s300_s20 = sshll.u32 %s292_s19, 4  ;;  %p1738_p9 = pneg %p1724_p7  ;;  %s1728_s20 = int_to_ptr.vmem [resolvable:$true] %s300_s20 }
  0x20   : > { %s1722_s17 = scalar_lea.hbm %s2150_s1, %s1154_s12  ;;  %s1326_s12 = scalar_lea.hbm %s2150_s1, 256 }
  0x21   : > { %s1321_s22 = scalar_lea.hbm %s1722_s17, 128  ;;  %p1327_p12 = scmp.lt.u32.totalorder %s1722_s17, %s2150_s1 }
  0x22   : > { %p1322_p8 = scmp.ne.s32.totalorder %s1722_s17, %s1321_s22  ;;  %p1328_p13 = scmp.lt.u32.totalorder %s1326_s12, %s1321_s22 }
  0x23   : > { %s2152_s23 = scalar_select %p1738_p9, 1, 0 }
  0x24   : > { %p1324_p10 = pnand %p1738_p9, %p1322_p8  ;;  %p1329_p0 = por %p1328_p13, %p1327_p12 }
  0x25   : > { %p1330_p2 = scmp.lt.u32.totalorder %s1321_s22, %s1722_s17 }
  0x26   : > { %p1325_p11 = pneg %p1324_p10 }
  0x27   : > { %p1331_p4 = por %p1330_p2, %p1329_p0 }
  0x29   : > { %p1332_p5 = pnand %p1331_p4, %p1325_p11 }
  0x2b   : > { %1335 = shalt.err (!%p1332_p5)
}
  0x2c   : > { %s1336_s16 = scalar_lea.vmem %s1728_s20, 128  ;;  %s1612_s19 = smov [#allocation6]  }
  0x2d   : > { %p1337_p6 = scmp.ne.s32.totalorder %s1728_s20, %s1336_s16  ;;  %s1341_s8 = sshll.u32 %s1612_s19, 4  ;;  %s1342_s8 = int_to_ptr.vmem [resolvable:$false] %s1341_s8 }
  0x2e   : > { %s1343_s9 = scalar_lea.vmem %s1342_s8, 256  ;;  %p1344_p3 = scmp.lt.s32.totalorder %s1728_s20, %s1342_s8 }
  0x2f   : > { %p1339_p8 = pnand %p1337_p6, %p1738_p9  ;;  %p1345_p1 = scmp.lt.s32.totalorder %s1343_s9, %s1336_s16 }
  0x31   : > { %p1340_p10 = pneg %p1339_p8  ;;  %p1346_p12 = por %p1345_p1, %p1344_p3 }
  0x33   : > { %p1347_p13 = pnand %p1346_p12, %p1340_p10 }
  0x35   : > { %1350 = shalt.err (!%p1347_p13)
}
  0x36   : > { %1189 = dma.hbm_to_vmem [thread:$0]  (!%p1724_p7), %s1722_s17, 128, %s1728_s20, %s1732_s21  }
  0x37   : > { %s1100_s22 = sshll.u32 %s1712_s11, 8  ;;  %s1156_s12 = sshll.u32 %s1606_s28, 12 }
  0x38   : > { %s2153_s3 = sld [smem:[#allocation31_spill]]  ;;  %s330_s16 = scalar_lea.vmem [#allocation9], %s1100_s22 }
  0x39   : > { %s337_s8 = sshll.u32 %s330_s16, 4  ;;  %s1773_s9 = scalar_lea.sflag [#allocation10], %s288_s10  ;;  %s1769_s8 = int_to_ptr.vmem [resolvable:$true] %s337_s8 }
  0x3e   : > { %s1767_s19 = scalar_lea.hbm %s2153_s3, %s1156_s12  ;;  %s1356_s12 = scalar_lea.hbm %s2153_s3, 8192 }
  0x3f   : > { %s1351_s1 = scalar_lea.hbm %s1767_s19, 4096  ;;  %p1357_p0 = scmp.lt.u32.totalorder %s1767_s19, %s2153_s3 }
  0x40   : > { %p1352_p1 = scmp.ne.s32.totalorder %s1767_s19, %s1351_s1  ;;  %p1358_p2 = scmp.lt.u32.totalorder %s1356_s12, %s1351_s1 }
  0x41   : > { %p1360_p5 = scmp.lt.u32.totalorder %s1351_s1, %s1767_s19 }
  0x42   : > { %p1354_p3 = pnand %p1352_p1, %p1738_p9  ;;  %p1359_p4 = por %p1358_p2, %p1357_p0 }
  0x44   : > { %p1355_p11 = pneg %p1354_p3  ;;  %p1361_p6 = por %p1360_p5, %p1359_p4 }
  0x46   : > { %p1362_p8 = pnand %p1361_p6, %p1355_p11 }
  0x48   : > { %1365 = shalt.err (!%p1362_p8)
}
  0x49   : > { %s1366_s10 = scalar_lea.vmem %s1769_s8, 4096  ;;  %s1613_s22 = smov [#allocation9]  }
  0x4a   : > { %p1367_p10 = scmp.ne.s32.totalorder %s1769_s8, %s1366_s10  ;;  %s1371_s16 = sshll.u32 %s1613_s22, 4  ;;  %s1372_s16 = int_to_ptr.vmem [resolvable:$false] %s1371_s16 }
  0x4b   : > { %s1373_s17 = scalar_lea.vmem %s1372_s16, 8192  ;;  %p1374_p1 = scmp.lt.s32.totalorder %s1769_s8, %s1372_s16 }
  0x4c   : > { %p1369_p12 = pnand %p1367_p10, %p1738_p9  ;;  %p1375_p3 = scmp.lt.s32.totalorder %s1373_s17, %s1366_s10 }
  0x4e   : > { %p1370_p13 = pneg %p1369_p12  ;;  %p1376_p0 = por %p1375_p3, %p1374_p1 }
  0x50   : > { %p1377_p2 = pnand %p1376_p0, %p1370_p13 }
  0x52   : > { %1380 = shalt.err (!%p1377_p2)
}
  0x53   : > { %s1614_s1 = smov 128   ;;  %s1615_s20 = smov 8  }
  0x54   : > { %1195 = dma.hbm_to_vmem [thread:$0]  (!%p1724_p7), %s1767_s19, 4096, %s1769_s8, %s1773_s9, %s1614_s1, %s1614_s1, %s1615_s20  }
  0x55   : > { %s1798_s12 = sadd.s32 4294967295, %s1610_s29   ;;  %s1089_s14 = sadd.s32 4294967294, %s1610_s29  }
  0x56   : > { %p89_p11 = scmp.ne.s32.totalorder %s1594_s25, %s1590_s24  ;;  %p2133_p4 = scmp.eq.s32.totalorder %s1798_s12, 0 }
  0x57   : > { %p240_p5 = scmp.eq.s32.totalorder %s1798_s12, 1  ;;  %p246_p6 = scmp.eq.s32.totalorder %s1089_s14, 1 }
  0x58   : > { %p1807_p8 = por %p2133_p4, %p89_p11  ;;  %p1090_p10 = scmp.ge.s32.totalorder %s1610_s29, 1 }
  0x59   : > { %p2155_p12 = scmp.ne.s32.totalorder %s1598_s26, %s1594_s25  ;;  %p1819_p1 = por %p246_p6, %p89_p11 }
  0x5a   : > { %s2154_s15 = scalar_select %p1807_p8, 1, 0 }
  0x5b   : > { %p1815_p13 = por %p240_p5, %p2155_p12  ;;  %p253_p3 = scmp.lt.s32.totalorder %s1610_s29, 3 }
  0x5c   : > { %s2158_s8 = scalar_select %p1819_p1, 1, 0 }
  0x5d   : > { %s2156_s19 = scalar_select %p1815_p13, 1, 0 }
  0x5e   : > { %2159 = sst [smem:[#allocation29_spill]] %s2158_s8  ;;  %p1824_p0 = pnand %p1090_p10, %p253_p3 }
  0x5f   : > { %2157 = sst [smem:[#allocation28_spill]] %s2156_s19  ;;  %s1616_s22 = smov [#allocation2]  }
  0x60   : > { %s2160_s10 = scalar_select %p1824_p0, 1, 0 }
  0x61   : > { %s268_s16 = sshll.u32 %s1616_s22, 4  ;;  %s1829_s17 = sshll.u32 %s1712_s11, 1  ;;  %s269_s16 = int_to_ptr.vmem [resolvable:$true] %s268_s16 }
  0x62   : > { %p1179_p2 = pneg %p1824_p0  ;;  %s1834_s1 = sshll.u32 %s1606_s28, 5 }
  0x63   : > { %s311_s20 = scalar_lea.vmem [#allocation8], %s1829_s17  ;;  %s1847_s22 = scalar_lea.hbm %s2116_s2, %s1834_s1 }
  0x64   : > { %s319_s14 = sshll.u32 %s311_s20, 4  ;;  %p1839_p11 = pnand %p1179_p2, %p2133_p4  ;;  %s1849_s14 = int_to_ptr.vmem [resolvable:$true] %s319_s14 }
  0x65   : > { %s1855_s29 = scalar_lea.hbm %s2118_s4, %s1834_s1  ;;  %s1381_s24 = scalar_lea.hbm %s2114_s0, 128 }
  0x66   : > { %p1382_p5 = scmp.ne.s32.totalorder %s2114_s0, %s1381_s24  ;;  %p1383_p6 = pneg %p1839_p11 }
  0x67   : > { %p1388_p3 = scmp.lt.u32.totalorder %s1381_s24, %s2114_s0 }
  0x68   : > { %p1384_p10 = pnand %p1383_p6, %p1382_p5 }
  0x6a   : > { %p1385_p12 = pneg %p1384_p10 }
  0x6c   : > { %p1390_p2 = pnand %p1388_p3, %p1385_p12 }
  0x6e   : > { %1393 = shalt.err (!%p1390_p2)
}
  0x6f   : > { %s1394_s26 = scalar_lea.vmem %s269_s16, 128  ;;  %p1402_p8 = scmp.lt.s32.totalorder %s269_s16, %s269_s16 }
  0x70   : > { %p1395_p4 = scmp.ne.s32.totalorder %s269_s16, %s1394_s26  ;;  %p1403_p0 = scmp.lt.s32.totalorder %s1394_s26, %s1394_s26 }
  0x72   : > { %p1397_p1 = pnand %p1395_p4, %p1383_p6  ;;  %p1404_p7 = por %p1403_p0, %p1402_p8 }
  0x74   : > { %p1398_p13 = pneg %p1397_p1 }
  0x76   : > { %p1405_p9 = pnand %p1404_p7, %p1398_p13 }
  0x78   : > { %1408 = shalt.err (!%p1405_p9)
}
  0x79   : > { %1182 = dma.hbm_to_vmem [thread:$0]  (!%p1839_p11), %s2114_s0, 128, %s269_s16, [#allocation3]  }
  0x7a   : > { %s1409_s8 = scalar_lea.hbm %s2120_s6, 16 }
  0x7b   : > { %p1410_p4 = scmp.ne.s32.totalorder %s2120_s6, %s1409_s8  ;;  %p1416_p9 = scmp.lt.u32.totalorder %s1409_s8, %s2120_s6 }
  0x7d   : > { %p1412_p8 = pnand %p1410_p4, %p1383_p6 }
  0x7f   : > { %p1413_p7 = pneg %p1412_p8 }
  0x81   : > { %p1418_p13 = pnand %p1416_p9, %p1413_p7 }
  0x83   : > { %1421 = shalt.err (!%p1418_p13)
}
  0x84   : > { %s1617_s7 = smov [#allocation14]   ;;  %s1422_s24 = scalar_lea.hbm %s1847_s22, 32 }
  0x85   : > { %1185 = dma.hbm_to_smem (!%p1839_p11), %s2120_s6, 16, %s1617_s7, [#allocation5]  }
  0x86   : > { %p1423_p1 = scmp.ne.s32.totalorder %s1847_s22, %s1422_s24  ;;  %p2162_p0 = scmp.ne.s32.totalorder %s2152_s23, 0 }
  0x87   : > { %s1427_s20 = scalar_lea.hbm %s2116_s2, 64  ;;  %p1428_p10 = scmp.lt.u32.totalorder %s1847_s22, %s2116_s2 }
  0x88   : > { %p1425_p5 = pnand %p1423_p1, %p2162_p0  ;;  %p1429_p12 = scmp.lt.u32.totalorder %s1427_s20, %s1422_s24 }
  0x89   : > { %p1431_p2 = scmp.lt.u32.totalorder %s1422_s24, %s1847_s22 }
  0x8a   : > { %p1426_p6 = pneg %p1425_p5  ;;  %p1430_p3 = por %p1429_p12, %p1428_p10 }
  0x8c   : > { %p1432_p4 = por %p1431_p2, %p1430_p3 }
  0x8e   : > { %p1433_p8 = pnand %p1432_p4, %p1426_p6 }
  0x90   : > { %1436 = shalt.err (!%p1433_p8)
}
  0x91   : > { %s1437_s13 = scalar_lea.vmem %s1849_s14, 32  ;;  %s1618_s26 = smov [#allocation8]  }
  0x92   : > { %p1438_p11 = scmp.ne.s32.totalorder %s1849_s14, %s1437_s13  ;;  %s1442_s7 = sshll.u32 %s1618_s26, 4  ;;  %s1443_s7 = int_to_ptr.vmem [resolvable:$false] %s1442_s7 }
  0x93   : > { %s1444_s16 = scalar_lea.vmem %s1443_s7, 64  ;;  %p1445_p13 = scmp.lt.s32.totalorder %s1849_s14, %s1443_s7 }
  0x94   : > { %p1440_p7 = pnand %p1438_p11, %p2162_p0  ;;  %p1446_p1 = scmp.lt.s32.totalorder %s1444_s16, %s1437_s13 }
  0x96   : > { %p1441_p9 = pneg %p1440_p7  ;;  %p1447_p5 = por %p1446_p1, %p1445_p13 }
  0x98   : > { %p1448_p10 = pnand %p1447_p5, %p1441_p9 }
  0x9a   : > { %1451 = shalt.err (!%p1448_p10)
}
  0x9b   : > { %p2163_p6 = scmp.ne.s32.totalorder %s2151_s18, 0  ;;  %s351_s28 = scalar_lea.vmem [#allocation11], %s1829_s17 }
  0x9c   : > { %s359_s24 = sshll.u32 %s351_s28, 4  ;;  %s1452_s19 = scalar_lea.hbm %s1855_s29, 32  ;;  %s360_s24 = int_to_ptr.vmem [resolvable:$true] %s359_s24 }
  0x9d   : > { %1192 = dma.hbm_to_vmem [thread:$0]  (!%p2163_p6), %s1847_s22, 32, %s1849_s14, %s1732_s21  }
  0x9e   : > { %p1453_p12 = scmp.ne.s32.totalorder %s1855_s29, %s1452_s19  ;;  %s1457_s30 = scalar_lea.hbm %s2118_s4, 64 }
  0x9f   : > { %p1458_p4 = scmp.lt.u32.totalorder %s1855_s29, %s2118_s4  ;;  %p1459_p8 = scmp.lt.u32.totalorder %s1457_s30, %s1452_s19 }
  0xa0   : > { %p1455_p3 = pnand %p1453_p12, %p2162_p0  ;;  %p1461_p7 = scmp.lt.u32.totalorder %s1452_s19, %s1855_s29 }
  0xa1   : > { %p1460_p11 = por %p1459_p8, %p1458_p4 }
  0xa2   : > { %p1456_p2 = pneg %p1455_p3 }
  0xa3   : > { %p1462_p9 = por %p1461_p7, %p1460_p11 }
  0xa5   : > { %p1463_p13 = pnand %p1462_p9, %p1456_p2 }
  0xa7   : > { %1466 = shalt.err (!%p1463_p13)
}
  0xa8   : > { %s1467_s21 = scalar_lea.vmem %s360_s24, 32  ;;  %s1619_s14 = smov [#allocation11]  }
  0xa9   : > { %p1468_p1 = scmp.ne.s32.totalorder %s360_s24, %s1467_s21  ;;  %s1472_s22 = sshll.u32 %s1619_s14, 4  ;;  %s1473_s22 = int_to_ptr.vmem [resolvable:$false] %s1472_s22 }
  0xaa   : > { %s1474_s26 = scalar_lea.vmem %s1473_s22, 64  ;;  %p1475_p12 = scmp.lt.s32.totalorder %s360_s24, %s1473_s22 }
  0xab   : > { %p1470_p5 = pnand %p1468_p1, %p2162_p0  ;;  %p1476_p3 = scmp.lt.s32.totalorder %s1474_s26, %s1467_s21 }
  0xad   : > { %p1471_p10 = pneg %p1470_p5  ;;  %p1477_p6 = por %p1476_p3, %p1475_p12 }
  0xaf   : > { %p1478_p4 = pnand %p1477_p6, %p1471_p10 }
  0xb1   : > { %1481 = shalt.err (!%p1478_p4)
}
  0xb2   : > { %p2164_p8 = scmp.ne.s32.totalorder %s2151_s18, 0  ;;  %s1941_s28 = scalar_lea.hbm %s2119_s5, %s1834_s1 }
  0xb3   : > { %s370_s19 = scalar_lea.vmem [#allocation12], %s1829_s17  ;;  %s367_s20 = scalar_lea.sflag [#allocation13], %s1712_s11 }
  0xb4   : > { %1198 = dma.hbm_to_vmem [thread:$0]  (!%p2164_p8), %s1855_s29, 32, %s360_s24, %s1773_s9  }
  0xb5   : > { %s378_s8 = sshll.u32 %s370_s19, 4  ;;  %s1482_s30 = scalar_lea.hbm %s1941_s28, 32  ;;  %s379_s8 = int_to_ptr.vmem [resolvable:$true] %s378_s8 }
  0xb6   : > { %p1483_p6 = scmp.ne.s32.totalorder %s1941_s28, %s1482_s30  ;;  %s1487_s9 = scalar_lea.hbm %s2119_s5, 64 }
  0xb7   : > { %p1488_p7 = scmp.lt.u32.totalorder %s1941_s28, %s2119_s5  ;;  %p1489_p9 = scmp.lt.u32.totalorder %s1487_s9, %s1482_s30 }
  0xb8   : > { %p1485_p2 = pnand %p1483_p6, %p2162_p0  ;;  %p1491_p1 = scmp.lt.u32.totalorder %s1482_s30, %s1941_s28 }
  0xb9   : > { %p1490_p13 = por %p1489_p9, %p1488_p7 }
  0xba   : > { %p1486_p11 = pneg %p1485_p2 }
  0xbb   : > { %p1492_p5 = por %p1491_p1, %p1490_p13 }
  0xbd   : > { %p1493_p10 = pnand %p1492_p5, %p1486_p11 }
  0xbf   : > { %1496 = shalt.err (!%p1493_p10)
}
  0xc0   : > { %s1497_s11 = scalar_lea.vmem %s379_s8, 32  ;;  %s1620_s17 = smov [#allocation12]  }
  0xc1   : > { %p1498_p12 = scmp.ne.s32.totalorder %s379_s8, %s1497_s11  ;;  %s1502_s13 = sshll.u32 %s1620_s17, 4  ;;  %s1503_s13 = int_to_ptr.vmem [resolvable:$false] %s1502_s13 }
  0xc2   : > { %s1504_s21 = scalar_lea.vmem %s1503_s13, 64  ;;  %p1505_p6 = scmp.lt.s32.totalorder %s379_s8, %s1503_s13 }
  0xc3   : > { %p1500_p3 = pnand %p1498_p12, %p2162_p0  ;;  %p1506_p2 = scmp.lt.s32.totalorder %s1504_s21, %s1497_s11 }
  0xc5   : > { %p1501_p4 = pneg %p1500_p3  ;;  %p1507_p8 = por %p1506_p2, %p1505_p6 }
  0xc7   : > { %p1508_p7 = pnand %p1507_p8, %p1501_p4 }
  0xc9   : > { %1511 = shalt.err (!%p1508_p7)
}
  0xca   : > { %p2165_p9 = scmp.ne.s32.totalorder %s2151_s18, 0  ;;  %p2166_p11 = scmp.ne.s32.totalorder %s2160_s10, 0 }
  0xcb   : > { %p2167_p13 = scmp.eq.s32.totalorder (!%p2166_p11), %s1798_s12, 0 }
  0xcc   : > { %1201 = dma.hbm_to_vmem [thread:$0]  (!%p2165_p9), %s1941_s28, 32, %s379_s8, %s367_s20  }
  0xcd   : > { %387 = sbr.rel (%p2166_p11) target bundleno = 759 (0x2f7), region = 48 }
  0xd4   : > { %1565 = dma.done.wait (%p2167_p13), [#allocation3], 128   ;;  %p2168_p0 = pmov %p2167_p13 }
  0xd5   : > { %s393_s23 = sand.u32 1, %s1798_s12   ;;  %s1970_s14 = sand.u32 1, %s1594_s25  }
  0xd6   : > { %1567 = vsyncadd (%p2168_p0), [#allocation3], 4294967168  ;;  %s1111_s18 = sshll.u32 %s1970_s14, 3  ;;  %s394_s22 = scalar_lea.sflag [#allocation7], %s393_s23 }
  0xd7   : > { %s1975_s26 = scalar_lea.vmem [#allocation6], %s1111_s18  ;;  %p2169_p8 = scmp.ne.s32.totalorder %s2154_s15, 0 }
  0xd9   : > { %1569 = dma.done.wait (%p2169_p8), %s394_s22, 160  }
  0xda   : > { %1571 = vsyncadd (%p2169_p8), %s394_s22, 4294967136  ;;  %s1982_s10 = sshll.u32 %s1970_s14, 1  ;;  %s1113_s7 = sshll.u32 %s1970_s14, 8 }
  0xdb   : > { %s406_s16 = scalar_lea.vmem [#allocation8], %s1982_s10  ;;  %s412_s28 = scalar_lea.sflag [#allocation10], %s393_s23 }
  0xdc   : > { %s1986_s19 = scalar_lea.vmem [#allocation9], %s1113_s7 }
  0xdd   : > { %1573 = dma.done.wait (%p2169_p8), %s412_s28, 4128  }
  0xde   : > { %1575 = vsyncadd (%p2169_p8), %s412_s28, 4294963168  ;;  %s424_s8 = scalar_lea.vmem [#allocation11], %s1982_s10  ;;  %s430_s20 = scalar_lea.sflag [#allocation13], %s1970_s14 }
  0xdf   : > { %s433_s30 = scalar_lea.vmem [#allocation12], %s1982_s10 }
  0xe0   : > { %1577 = dma.done.wait (%p2169_p8), %s430_s20, 32  }
  0xe1   : > { %1579 = vsyncadd (%p2169_p8), %s430_s20, 4294967264  ;;  %p2170_p1 = pmov %p2168_p0 }
  0xe2   : > { %p2171_p5 = pmov %p2168_p0 }
  0xe3   : > { %1581 = dma.done.wait (%p2170_p1), [#allocation5], 16  }
  0xe4   : > { %1583 = vsyncadd (%p2171_p5), [#allocation5], 4294967280 }
  0xe5   : > { %442 = sfence }
  0xe6   : > { %v489_v0 = vld [vmem:[#allocation2] sm:$0xff]  ;;  %v1621_v1 = vmov 0   ;;  %v1622_v2 = vmov 2   ;;  %v1276_v5 = vld [vmem:[%s1986_s19 + $0x14] ss:$8 sps:$4 sm:$0xff]   ;;  %v1623_v8 = vmov 1   ;;  %v497_v37 = vlaneseq }
  0xe7   : > { %1268 = vset.pattern.permute.xlu0 %v1621_v1  ;;  %1270 = vset.pattern.permute.xlu1 %v1622_v2  ;;  %v1273_v3 = vld [vmem:[%s1986_s19 + $0x4] ss:$8 sps:$4 sm:$0xff]   ;;  %v1275_v4 = vld [vmem:[%s1986_s19] ss:$8 sps:$4 sm:$0xff]   ;;  %v1278_v6 = vld [vmem:[%s1986_s19 + $0x10] ss:$8 sps:$4 sm:$0xff]  }
  0xe8   : > { %493 = vperm.xlu0 %1268, %v489_v0   ;;  %544 = vperm.xlu1 %1270, %v489_v0   ;;  %v1279_v7 = vld [vmem:[%s1986_s19 + $0x24] ss:$8 sps:$4 sm:$0xff]   ;;  %v1624_v9 = vmov 3   ;;  %v1281_v10 = vld [vmem:[%s1986_s19 + $0x20] ss:$8 sps:$4 sm:$0xff]   ;;  %v498_v38 = vshrl.u32 %v497_v37, 7 }
  0xe9   : > { %817 = vmatprep.subr.bf16.mxu0 %v1273_v3  ;;  %v1282_v11 = vld [vmem:[%s1986_s19 + $0x34] ss:$8 sps:$4 sm:$0xff]   ;;  %v1284_v12 = vld [vmem:[%s1986_s19 + $0x30] ss:$8 sps:$4 sm:$0xff]   ;;  %v1285_v13 = vld [vmem:[%s1986_s19 + $0x44] ss:$8 sps:$4 sm:$0xff]  }
  0xea   : > { %818 = vmatpush1.bf16.msra.mxu0 %v1275_v4  ;;  %v1287_v14 = vld [vmem:[%s1986_s19 + $0x40] ss:$8 sps:$4 sm:$0xff]   ;;  %v1288_v15 = vld [vmem:[%s1986_s19 + $0x54] ss:$8 sps:$4 sm:$0xff]   ;;  %v1290_v16 = vld [vmem:[%s1986_s19 + $0x50] ss:$8 sps:$4 sm:$0xff]  }
  0xeb   : > { %819 = vmatprep.subr.bf16.mxu0 %v1276_v5  ;;  %v1291_v17 = vld [vmem:[%s1986_s19 + $0x64] ss:$8 sps:$4 sm:$0xff]   ;;  %v1293_v18 = vld [vmem:[%s1986_s19 + $0x60] ss:$8 sps:$4 sm:$0xff]   ;;  %v1294_v19 = vld [vmem:[%s1986_s19 + $0x74] ss:$8 sps:$4 sm:$0xff]  }
  0xec   : > { %1269 = vset.pattern.permute.xlu0 %v1623_v8  ;;  %1271 = vset.pattern.permute.xlu1 %v1624_v9  ;;  %v1296_v20 = vld [vmem:[%s1986_s19 + $0x70] ss:$8 sps:$4 sm:$0xff]   ;;  %v1297_v21 = vld [vmem:[%s1986_s19 + $0x84] ss:$8 sps:$4 sm:$0xff]   ;;  %v1299_v22 = vld [vmem:[%s1986_s19 + $0x80] ss:$8 sps:$4 sm:$0xff]  }
  0xed   : > { %518 = vperm.xlu0 %1269, %v489_v0   ;;  %570 = vperm.xlu1 %1271, %v489_v0   ;;  %v1300_v23 = vld [vmem:[%s1986_s19 + $0x94] ss:$8 sps:$4 sm:$0xff]   ;;  %v1302_v24 = vld [vmem:[%s1986_s19 + $0x90] ss:$8 sps:$4 sm:$0xff]   ;;  %v1303_v25 = vld [vmem:[%s1986_s19 + $0xa4] ss:$8 sps:$4 sm:$0xff]  }
  0xee   : > { %820 = vmatpush1.bf16.msra.mxu0 %v1278_v6  ;;  %v1305_v26 = vld [vmem:[%s1986_s19 + $0xa0] ss:$8 sps:$4 sm:$0xff]   ;;  %v1306_v27 = vld [vmem:[%s1986_s19 + $0xb4] ss:$8 sps:$4 sm:$0xff]   ;;  %v1308_v28 = vld [vmem:[%s1986_s19 + $0xb0] ss:$8 sps:$4 sm:$0xff]  }
  0xef   : > { %821 = vmatprep.subr.bf16.mxu0 %v1279_v7  ;;  %v1309_v29 = vld [vmem:[%s1986_s19 + $0xc4] ss:$8 sps:$4 sm:$0xff]   ;;  %v1311_v30 = vld [vmem:[%s1986_s19 + $0xc0] ss:$8 sps:$4 sm:$0xff]   ;;  %v1312_v31 = vld [vmem:[%s1986_s19 + $0xd4] ss:$8 sps:$4 sm:$0xff]  }
  0xf0   : > { %v1314_v32 = vld [vmem:[%s1986_s19 + $0xd0] ss:$8 sps:$4 sm:$0xff]   ;;  %v1315_v33 = vld [vmem:[%s1986_s19 + $0xe4] ss:$8 sps:$4 sm:$0xff]   ;;  %v1317_v34 = vld [vmem:[%s1986_s19 + $0xe0] ss:$8 sps:$4 sm:$0xff]  }
  0xf1   : > { %1272 = vset.pattern.permute.xlu0 %v1624_v9  ;;  %v1318_v35 = vld [vmem:[%s1986_s19 + $0xf4] ss:$8 sps:$4 sm:$0xff]   ;;  %v1320_v36 = vld [vmem:[%s1986_s19 + $0xf0] ss:$8 sps:$4 sm:$0xff]   ;;  %v2035_v39 = vsub.s32 0, %v498_v38  ;;  %v503_v40 = vsub.s32 4, %v498_v38 }
  0xf2   : > { %822 = vmatpush1.bf16.msra.mxu0 %v1281_v10  ;;  %v2037_v41 = vsub.s32 1, %v498_v38  ;;  %v527_v42 = vsub.s32 5, %v498_v38  ;;  %v490_v43 = vld [vmem:[%s1975_s26] sm:$0xff]  ;;  %v549_v44 = vsub.s32 2, %v498_v38  ;;  %v553_v45 = vsub.s32 6, %v498_v38  ;;  %s2172_s12 = sld [smem:[#allocation28_spill]] }
  0xf3   : > { %823 = vmatprep.subr.bf16.mxu0 %v1282_v11  ;;  %v575_v46 = vsub.s32 3, %v498_v38  ;;  %v579_v47 = vsub.s32 7, %v498_v38  ;;  %v500_v48 = vrot.slane %v490_v43, %v2035_v39  ;;  %v504_v49 = vrot.slane %v490_v43, %v503_v40  ;;  %v595_v10 = vld [vmem:[%s406_s16] sm:$0x3]  ;;  %s877_s15 = sld [smem:[#allocation14 + %s1602_s27]]  ;;  %s1151_s3 = sshll.u32 %s1602_s27, 7 }
  0xf4   : > { %v524_v50 = vrot.slane %v490_v43, %v2037_v41  ;;  %v528_v51 = vrot.slane %v490_v43, %v527_v42  ;;  %v550_v52 = vrot.slane %v490_v43, %v549_v44  ;;  %v554_v53 = vrot.slane %v490_v43, %v553_v45  ;;  %s488_s29 = scalar_lea.vmem [#allocation15], %s1111_s18  ;;  %s2173_s11 = sld [smem:[#allocation32_spill]] }
  0xf5   : > { %v576_v56 = vrot.slane %v490_v43, %v575_v46  ;;  %v580_v57 = vrot.slane %v490_v43, %v579_v47  ;;  %v510_v58 = vrot.slane %v500_v48, %v2035_v39  ;;  %v514_v59 = vrot.slane %v504_v49, %v2035_v39  ;;  %s897_s9 = sshll.u32 %s488_s29, 4  ;;  %s883_s13 = scalar_lea.sflag [#allocation4], %s1970_s14  ;;  %s2067_s9 = int_to_ptr.vmem [resolvable:$true] %s897_s9 }
  0xf6   : > { %824 = vmatpush1.bf16.msra.mxu0 %v1284_v12  ;;  %v534_v60 = vrot.slane %v524_v50, %v2037_v41  ;;  %v538_v61 = vrot.slane %v528_v51, %v2037_v41  ;;  %v560_v62 = vrot.slane %v550_v52, %v549_v44  ;;  %v564_v63 = vrot.slane %v554_v53, %v549_v44  ;;  %s1512_s21 = scalar_lea.vmem %s2067_s9, 128  ;;  %s1625_s27 = smov [#allocation15]  }
  0xf7   : > { %825 = vmatprep.subr.bf16.mxu0 %v1285_v13  ;;  %v586_v0 = vrot.slane %v576_v56, %v575_v46  ;;  %v590_v1 = vrot.slane %v580_v57, %v575_v46  ;;  %vm880_vm0 = vcmask 7168   ;;  %p1513_p10 = scmp.ne.s32.totalorder %s2067_s9, %s1512_s21  ;;  %s1516_s23 = sshll.u32 %s1625_s27, 4  ;;  %s1517_s23 = int_to_ptr.vmem [resolvable:$false] %s1516_s23 }
  0xf8   : > { %p2174_p12 = scmp.ne.s32.totalorder %s2172_s12, 0  ;;  %s1518_s18 = scalar_lea.vmem %s1517_s23, 256 }
  0xf9   : > { %v878_v46 = vstv %s877_s15  ;;  %p1519_p6 = scmp.lt.s32.totalorder %s2067_s9, %s1517_s23  ;;  %p1520_p2 = scmp.lt.s32.totalorder %s1518_s18, %s1512_s21 }
  0xfa   : > { %826 = vmatpush1.bf16.msra.mxu0 %v1287_v14  ;;  %s2065_s17 = scalar_lea.hbm %s2173_s11, %s1151_s3  ;;  %p1514_p3 = pnand %p1513_p10, %p2174_p12 }
  0xfb   : > { %827 = vmatprep.subr.bf16.mxu0 %v1288_v15  ;;  %p1521_p7 = por %p1520_p2, %p1519_p6 }
  0xfc   : > { %p1515_p4 = pneg %p1514_p3 }
  0xfe   : > { %828 = vmatpush1.bf16.msra.mxu0 %v1290_v16  ;;  %p1522_p9 = pnand %p1521_p7, %p1515_p4 }
  0xff   : > { %829 = vmatprep.subr.bf16.mxu0 %v1291_v17  ;;  %v600_v17 = vrot.slane %v595_v10, %v2035_v39 }
 0x102   : > { %830 = vmatpush1.bf16.msra.mxu0 %v1293_v18  ;;  %v604_v18 = vrot.slane %v595_v10, %v2037_v41 }
 0x103   : > { %831 = vmatprep.subr.bf16.mxu0 %v1294_v19 }
 0x106   : > { %832 = vmatpush1.bf16.msra.mxu0 %v1296_v20 }
 0x107   : > { %833 = vmatprep.subr.bf16.mxu0 %v1297_v21 }
 0x10a   : > { %834 = vmatpush1.bf16.msra.mxu0 %v1299_v22 }
 0x10b   : > { %835 = vmatprep.subr.bf16.mxu0 %v1300_v23 }
 0x10e   : > { %836 = vmatpush1.bf16.msra.mxu0 %v1302_v24 }
 0x10f   : > { %837 = vmatprep.subr.bf16.mxu0 %v1303_v25 }
 0x112   : > { %838 = vmatpush1.bf16.msra.mxu0 %v1305_v26 }
 0x113   : > { %839 = vmatprep.subr.bf16.mxu0 %v1306_v27  ;;  %v645_v27 = vld [vmem:[%s424_s8] sm:$0x3] }
 0x116   : > { %840 = vmatpush1.bf16.msra.mxu0 %v1308_v28  ;;  %v650_v28 = vrot.slane %v645_v27, %v2035_v39 }
 0x117   : > { %841 = vmatprep.subr.bf16.mxu0 %v1309_v29  ;;  %v860_v29 = vld [vmem:[%s433_s30] sm:$0x3] }
 0x11a   : > { %842 = vmatpush1.bf16.msra.mxu0 %v1311_v30  ;;  %v654_v30 = vrot.slane %v645_v27, %v2037_v41 }
 0x11b   : > { %843 = vmatprep.subr.bf16.mxu0 %v1312_v31 }
 0x11e   : > { %844 = vmatpush1.bf16.msra.mxu0 %v1314_v32 }
 0x11f   : > { %845 = vmatprep.subr.bf16.mxu0 %v1315_v33  ;;  %v865_v33 = vrot.slane %v860_v29, %v2035_v39 }
 0x122   : > { %846 = vmatpush1.bf16.msra.mxu0 %v1317_v34 }
 0x123   : > { %847 = vmatprep.subr.bf16.mxu0 %v1318_v35 }
 0x126   : > { %848 = vmatpush1.bf16.msra.mxu0 %v1320_v36  ;;  %v869_v36 = vrot.slane %v860_v29, %v2037_v41 }
 0x167   : > { %v494_v54 = vpop.permute.xlu0 %493  ;;  %v545_v55 = vpop.permute.xlu1 %544 }
 0x168   : > { %v515_v4 = vmul.f32 %v510_v58, %v494_v54  ;;  %v516_v5 = vmul.f32 %v514_v59, %v494_v54  ;;  %v565_v8 = vmul.f32 %v560_v62, %v545_v55  ;;  %v566_v9 = vmul.f32 %v564_v63, %v545_v55 }
 0x16c   : > { %v519_v2 = vpop.permute.xlu0 %518  ;;  %v571_v3 = vpop.permute.xlu1 %570 }
 0x16d   : > { %v539_v6 = vmul.f32 %v534_v60, %v519_v2  ;;  %v540_v7 = vmul.f32 %v538_v61, %v519_v2  ;;  %v591_v13 = vmul.f32 %v586_v0, %v571_v3  ;;  %v592_v14 = vmul.f32 %v590_v1, %v571_v3 }
 0x16f   : > { %v541_v11 = vadd.f32 %v539_v6, %v515_v4  ;;  %v542_v12 = vadd.f32 %v540_v7, %v516_v5 }
 0x171   : > { %v567_v15 = vadd.f32 %v565_v8, %v541_v11  ;;  %v568_v16 = vadd.f32 %v566_v9, %v542_v12 }
 0x173   : > { %v593_v19 = vadd.f32 %v591_v13, %v567_v15  ;;  %v594_v20 = vadd.f32 %v592_v14, %v568_v16 }
 0x175   : > { %v608_v21 = vadd.f32 %v604_v18, %v594_v20  ;;  %v607_v22 = vadd.f32 %v600_v17, %v593_v19 }
 0x177   : > { %v610_v23 = vmax.f32 %v608_v21, 0.0  ;;  %v609_v24 = vmax.f32 %v607_v22, 0.0 }
 0x179   : > { %v612_v25 = vpack.c.bf16 %v610_v23, %v610_v23  ;;  %v611_v26 = vpack.c.bf16 %v609_v24, %v609_v24 }
 0x17b   : > { %849 = vmatprep.mubr.bf16.mxu0 %v612_v25 }
 0x17c   : > { %850 = vmatmul.mubr.bf16.vlgmr.msra.gmra.mrb[0].mxu0 %v611_v26 }
 0x24f   : > { %v851_v31 = vpop.f32.mrb[0].mxu0 }
 0x250   : > { %v852_v32 = vadd.f32 %v851_v31, %v650_v28  ;;  %v853_v34 = vpop.f32.mrb[1].mxu0 }
 0x251   : > { %v854_v35 = vadd.f32 %v853_v34, %v654_v30  ;;  %v855_v37 = vpop.f32.mrb[2].mxu0 }
 0x252   : > { %v858_v38 = vmax.f32 %v852_v32, 0.0  ;;  %v856_v40 = vpop.f32.mrb[3].mxu0 }
 0x253   : > { %v859_v42 = vmax.f32 %v854_v35, 0.0 }
 0x254   : > { %v872_v43 = vmul.f32 %v865_v33, %v858_v38 }
 0x255   : > { %v873_v44 = vmul.f32 %v869_v36, %v859_v42 }
 0x257   : > { %v874_v45 = vadd.f32 %v873_v44, %v872_v43 }
 0x259   : > { %875 = vadd.xlane.f32.xlu1 %v874_v45 }
 0x2e6   : > { %v876_v39 = vpop.xlane.xlu1 %875 }
 0x2e7   : > { %v879_v47 = vadd.f32 %v878_v46, %v876_v39 }
 0x2e9   : > { %881 = vst.msk [vmem:[%s488_s29] sm:$0xff] %vm880_vm0, %v879_v47 }
 0x2ea   : > { %1525 = shalt.err (!%p1522_p9)
}
 0x2eb   : > { %s1526_s14 = scalar_lea.hbm %s2065_s17, 128  ;;  %s1530_s10 = scalar_lea.hbm %s2173_s11, 256 }
 0x2ec   : > { %p1527_p11 = scmp.ne.s32.totalorder %s2065_s17, %s1526_s14  ;;  %p1531_p8 = scmp.lt.u32.totalorder %s2065_s17, %s2173_s11 }
 0x2ed   : > { %p1532_p1 = scmp.lt.u32.totalorder %s1530_s10, %s1526_s14  ;;  %p1534_p10 = scmp.lt.u32.totalorder %s1526_s14, %s2065_s17 }
 0x2ee   : > { %p1528_p13 = pnand %p1527_p11, %p2174_p12 }
 0x2ef   : > { %p1533_p5 = por %p1532_p1, %p1531_p8 }
 0x2f0   : > { %p1529_p0 = pneg %p1528_p13 }
 0x2f1   : > { %p1535_p3 = por %p1534_p10, %p1533_p5 }
 0x2f3   : > { %p1536_p4 = pnand %p1535_p3, %p1529_p0 }
 0x2f5   : > { %1539 = shalt.err (!%p1536_p4)
}
 0x2f6   : > { %1177 = dma.vmem_to_hbm [thread:$0]  (%p2174_p12), %s2067_s9, 128, %s2065_s17, %s883_s13  }
 0x2f7 PF: > { %s2175_s28 = sld [smem:[#allocation22_spill]]  ;;  %s2176_s19 = sld [smem:[#allocation29_spill]] }
 0x2f8   : > { %s2177_s8 = sld [smem:[#allocation25_spill]] }
 0x2fd   : > { %s909_s20 = sand.u32 1, %s2175_s28   ;;  %p2178_p6 = scmp.ne.s32.totalorder %s2176_s19, 0 }
 0x2fe   : > { %p2179_p2 = scmp.ge.s32.totalorder %s2177_s8, 2  ;;  %s910_s30 = scalar_lea.sflag [#allocation4], %s909_s20 }
 0x300   : > { %p1203_p7 = pnand %p2179_p2, %p2178_p6 }
 0x302   : > { %1585 = dma.done.wait (!%p1203_p7), %s910_s30, 128  }
 0x303   : > { %1587 = vsyncadd (!%p1203_p7), %s910_s30, 4294967168  ;;  %s31_s29 = sadd.s32 1, %s2177_s8   ;;  %s2180_s15 = sld [smem:[#allocation23_spill]] }
 0x304   : > { %p28_p9 = scmp.ge.s32.totalorder %s31_s29, 4   ;;  %s2181_s26 = sld [smem:[#allocation27_spill]] }
 0x305   : > { %s2182_s27 = sld [smem:[#allocation24_spill]]  ;;  %s2183_s28 = sld [smem:[#allocation26_spill]] }
 0x306   : > { %s2184_s24 = smov %s1594_s25  ;;  %30 = sbr.rel (!%p28_p9) target bundleno = 16 (0x10), region = 152 }
 0x309   : > { %s2185_s25 = smov %s2180_s15 }
 0x30d   :  { %915 = vsyncpa [#allocation3], 1 }
 0x30e   :  { %917 = vsyncpa [#allocation3 + $0x1], 1 }
 0x30f   :  { %918 = vsyncpa [#allocation7], 1 }
 0x310   :  { %920 = vsyncpa [#allocation7 + $0x1], 1 }
 0x311   :  { %921 = vsyncpa [#allocation10], 1 }
 0x312   :  { %923 = vsyncpa [#allocation10 + $0x1], 1 }
 0x313   :  { %924 = vsyncpa [#allocation13], 1 }
 0x314   :  { %926 = vsyncpa [#allocation13 + $0x1], 1 }
 0x315   :  { %927 = vsyncpa [#allocation4], 1 }
 0x316   :  { %929 = vsyncpa [#allocation4 + $0x1], 1 }
 0x317   :  { %930 = vsyncpa [#allocation5], 1 }
 0x318   :  { %932 = vsyncpa [#allocation5 + $0x1], 1 }

</bundles_post_ra>
